<compile_context>
chip_gen: v7x
topology: tpu7x:2x2x1
jax: 0.10.0
libtpu: 0.0.40
codegen_flags: <defaults>
</compile_context>

<pallas_src>
from functools import partial

import jax
import jax.numpy as jnp
from jax.experimental import pallas as pl
from jax.experimental.pallas import tpu as pltpu


def _round_up(n, m):
    return ((n + m - 1) // m) * m


def _vmem_capacity_bytes():
    """Generation-aware VMEM capacity; conservative 64 MiB fallback (v7x/TC)."""
    try:
        info = pltpu.get_tpu_info()
        for attr in ("vmem_capacity_bytes", "vmem_size_bytes", "vmem_bytes"):
            v = getattr(info, attr, None)
            if v:
                return int(v)
    except Exception:
        pass
    return 64 * 1024 * 1024


def _biaffine_kernel(x_ref, u_ref, y_ref, o_ref):
    # x_ref: (1, TLX, I_pad)        u_ref: (I_pad, TO*J_pad)
    # y_ref: (1, J_pad, Ly_pad)     o_ref: (1, TO, TLX, Ly_pad)
    x_b = x_ref[0]                       # [TLX, I_pad]
    y_t = y_ref[0]                       # [J_pad, Ly_pad]  (pre-transposed)
    to = o_ref.shape[1]                  # TO <= 8 (static)
    j_pad = y_t.shape[0]

    # Fused first contraction across the TO output channels of this block:
    # one wide MXU matmul instead of TO narrow (N=J_pad) ones.
    tmp = jnp.dot(x_b, u_ref[...], preferred_element_type=jnp.float32)
    # bf16 path double-rounds here (f32 tmp -> bf16 for the 2nd dot); this is
    # the intended trade (keeping f32 would ~3x the MXU passes of the 2nd dot).
    tmp = tmp.astype(y_t.dtype)          # [TLX, TO*J_pad]

    for o in range(to):                  # small static unroll (TO <= 8)
        tmp_o = tmp[:, o * j_pad:(o + 1) * j_pad]   # 128-aligned lane slice
        # Second contraction: plain matmul, y already transposed in wrapper.
        res = jnp.dot(tmp_o, y_t, preferred_element_type=jnp.float32)
        o_ref[0, o] = res.astype(o_ref.dtype)       # lane-dense [TLX, Ly_pad]


@partial(jax.jit, static_argnames=("bias_x", "bias_y", "compute_dtype",
                                   "out_dtype", "tile_lx", "transpose_output"))
def biaffine_forward(x, y, U, bias_x=True, bias_y=True, *,
                     compute_dtype=jnp.bfloat16, out_dtype=jnp.float32,
                     tile_lx=None, transpose_output=True):
    """x: [B, Lx, in], y: [B, Ly, in], U: [in+bx, out, in+by] -> [B, Lx, Ly, out]."""
    B, Lx, in_x = x.shape
    _, Ly, in_y = y.shape
    I, O, J = U.shape
    assert I == in_x + int(bias_x) and J == in_y + int(bias_y), \
        "U must have shape (in+bias_x, out, in+bias_y)"

    dt = jnp.dtype(compute_dtype)
    odt = jnp.dtype(out_dtype)
    itemsize = dt.itemsize
    out_itemsize = odt.itemsize

    # ---- padded contraction / output dims --------------------------------
    I_pad = _round_up(I, 128)
    J_pad = _round_up(J, 128)
    # Lane-dense output width; 256 also fills the v6e/v7x MXU N dimension.
    Ly_pad = _round_up(Ly, 256) if Ly > 128 else _round_up(Ly, 128)

    # ---- generation-aware VMEM budget -------------------------------------
    vmem_cap = _vmem_capacity_bytes()
    vmem_limit = int(vmem_cap * 7 // 8)        # headroom for compiler scratch
    budget = vmem_limit - (8 << 20)            # our own accounting margin

    # ---- O tiling: bound the resident (double-buffered!) U block ----------
    TO = min(O, 8)                             # also caps the static unroll
    while TO > 1 and 2 * I_pad * TO * J_pad * itemsize > budget // 3:
        TO = max(1, TO // 2)
    # TODO(synk): if even TO == 1 leaves 2*I_pad*J_pad*itemsize over budget
    # (very large in_size), additionally tile the J/I contraction dims with an
    # "arbitrary" grid axis + f32 accumulator scratch.
    O_pad = _round_up(O, TO)
    num_og = O_pad // TO

    # ---- Lx tiling ---------------------------------------------------------
    # Sub-32-bit dtypes pack rows per sublane: align 8 (f32) / 16 (bf16) / 32.
    align = max(8, 32 // itemsize)
    lx_full = _round_up(Lx, align)

    def vmem_use(tlx):
        x_b = 2 * tlx * I_pad * itemsize                 # double-buffered x
        y_b = 2 * J_pad * Ly_pad * itemsize              # double-buffered y
        u_b = 2 * I_pad * TO * J_pad * itemsize          # double-buffered U
        o_b = 2 * TO * tlx * Ly_pad * out_itemsize       # double-buffered out
        tmp_b = tlx * TO * J_pad * (4 + itemsize)        # f32 tmp + cast copy
        res_b = tlx * Ly_pad * (4 + out_itemsize)        # per-o result
        return x_b + y_b + u_b + o_b + tmp_b + res_b

    if tile_lx is None:
        tile_lx = min(lx_full, 2048)                     # big tiles amortize
        while tile_lx > align and vmem_use(tile_lx) > budget:
            tile_lx = max(align, _round_up(tile_lx // 2, align))
    tile_lx = _round_up(min(max(int(tile_lx), align), lx_full), align)
    Lx_pad = _round_up(Lx, tile_lx)
    num_t = Lx_pad // tile_lx

    # v7x dual-TC / megacore: make sure there are >= 2 parallel grid steps.
    if B * num_t * num_og < 2 and tile_lx > align:
        tile_lx = max(align, _round_up(tile_lx // 2, align))
        Lx_pad = _round_up(Lx, tile_lx)
        num_t = Lx_pad // tile_lx

    # ---- inputs: cast + pad + one-hot bias, one materialization each ------
    x_p = jnp.pad(x.astype(dt), ((0, 0), (0, Lx_pad - Lx), (0, I_pad - in_x)))
    if bias_x:
        x_p = x_p + (jnp.arange(I_pad) == in_x).astype(dt)        # bias column

    # y pre-transposed once so the kernel's 2nd dot needs no in-kernel vxpose.
    y_t = jnp.transpose(y.astype(dt), (0, 2, 1))                   # [B, in_y, Ly]
    y_p = jnp.pad(y_t, ((0, 0), (0, J_pad - in_y), (0, Ly_pad - Ly)))
    if bias_y:
        y_p = y_p + (jnp.arange(J_pad) == in_y).astype(dt)[:, None]  # bias row

    # U fused o-major along the last dim: [I_pad, O_pad*J_pad].
    U_p = jnp.pad(U.astype(dt), ((0, I_pad - I), (0, O_pad - O), (0, J_pad - J)))
    U_flat = U_p.reshape(I_pad, O_pad * J_pad)

    # ---- cost estimate (lets XLA overlap surrounding pads/casts) ----------
    flops = 2 * B * Lx_pad * O_pad * J_pad * (I_pad + Ly_pad)
    bytes_accessed = ((x_p.size + y_p.size + U_flat.size) * itemsize
                      + B * O_pad * Lx_pad * Ly_pad * out_itemsize)
    cost = pl.CostEstimate(flops=flops, transcendentals=0,
                           bytes_accessed=bytes_accessed)

    out = pl.pallas_call(
        _biaffine_kernel,
        out_shape=jax.ShapeDtypeStruct((B, O_pad, Lx_pad, Ly_pad), odt),
        grid_spec=pltpu.PrefetchScalarGridSpec(
            num_scalar_prefetch=0,
            # og outermost: U block only changes num_og times total (usually 1
            # => fully resident); within an og group y is batch-resident.
            grid=(num_og, B, num_t),
            in_specs=[
                pl.BlockSpec((1, tile_lx, I_pad), lambda og, b, t: (b, t, 0)),
                pl.BlockSpec((I_pad, TO * J_pad), lambda og, b, t: (0, og)),
                pl.BlockSpec((1, J_pad, Ly_pad), lambda og, b, t: (b, 0, 0)),
            ],
            out_specs=pl.BlockSpec((1, TO, tile_lx, Ly_pad),
                                   lambda og, b, t: (b, og, t, 0)),
        ),
        compiler_params=pltpu.CompilerParams(
            dimension_semantics=("parallel", "parallel", "parallel"),
            vmem_limit_bytes=vmem_limit,
        ),
        cost_estimate=cost,
    )(x_p, U_flat, y_p)

    out = out[:, :O, :Lx, :Ly]                 # drop O / Lx / Ly padding
    if transpose_output:
        # Match the PyTorch module layout [B, Lx, Ly, O].  Callers that can
        # consume the lane-dense [B, O, Lx, Ly] layout should pass
        # transpose_output=False and skip this extra HBM pass.
        out = jnp.transpose(out, (0, 2, 3, 1))
    return out


if __name__ == "__main__":
    # Small shapes consistent with the module: batch=2, seq=8, hidden=32, out=4.
    B, Lx, Ly, in_size, out_size = 2, 8, 8, 32, 4
    bias_x, bias_y = True, True

    key = jax.random.PRNGKey(0)
    kx, ky, ku = jax.random.split(key, 3)

    x = jax.random.normal(kx, (B, Lx, in_size), dtype=jnp.float32)
    y = jax.random.normal(ky, (B, Ly, in_size), dtype=jnp.float32)
    # Parameter init mirrors torch: normal(mean=0, std=0.1), same shape.
    U = 0.1 * jax.random.normal(
        ku, (in_size + int(bias_x), out_size, in_size + int(bias_y)),
        dtype=jnp.float32)

    # Pure-JAX reference of the einsum semantics (full-precision).
    xb = jnp.concatenate([x, jnp.ones_like(x[..., :1])], axis=-1)
    yb = jnp.concatenate([y, jnp.ones_like(y[..., :1])], axis=-1)
    ref = jnp.einsum("bxi,ioj,byj->bxyo", xb, U, yb,
                     precision=jax.lax.Precision.HIGHEST)

    # f32 validation path.
    out_f32 = biaffine_forward(x, y, U, bias_x=bias_x, bias_y=bias_y,
                               compute_dtype=jnp.float32)
    out_f32 = jax.block_until_ready(out_f32)
    assert out_f32.shape == (B, Lx, Ly, out_size)
    assert jnp.allclose(out_f32, ref, atol=2e-3, rtol=2e-3)

    # Default bf16 MXU-input fast path (f32 accumulation) — looser tolerance.
    out_bf16 = biaffine_forward(x, y, U, bias_x=bias_x, bias_y=bias_y)
    out_bf16 = jax.block_until_ready(out_bf16)
    assert out_bf16.shape == (B, Lx, Ly, out_size)
    assert jnp.allclose(out_bf16, ref, atol=3e-1, rtol=1e-1)

    print("KERNEL_OK")
</pallas_src>

<mosaic_0001>
module attributes {stable_mosaic.version = 11 : i64} {
  func.func @_biaffine_kernel(%arg0: i32, %arg1: i32, %arg2: i32, %arg3: memref<1x8x128xf32, #tpu.memory_space<vmem>>, %arg4: memref<128x512xf32, #tpu.memory_space<vmem>>, %arg5: memref<1x128x128xf32, #tpu.memory_space<vmem>>, %arg6: memref<1x4x8x128xf32, #tpu.memory_space<vmem>>) attributes {dimension_semantics = [#tpu.dimension_semantics<parallel>, #tpu.dimension_semantics<parallel>, #tpu.dimension_semantics<parallel>], iteration_bounds = array<i64: 1, 2, 1>, scalar_prefetch = 0 : i64, scratch_operands = 0 : i64, tpu.core_type = #tpu.core_type<tc>, window_params = [{transform_indices = @transform_0, window_bounds = array<i64: 1, 8, 128>}, {transform_indices = @transform_1, window_bounds = array<i64: 128, 512>}, {transform_indices = @transform_2, window_bounds = array<i64: 1, 128, 128>}, {transform_indices = @transform_3, window_bounds = array<i64: 1, 4, 8, 128>}]} {
    %c0 = arith.constant 0 : index
    %c0_0 = arith.constant 0 : index
    %c0_1 = arith.constant 0 : index
    %0 = vector.load %arg3[%c0, %c0_0, %c0_1] : memref<1x8x128xf32, #tpu.memory_space<vmem>>, vector<1x8x128xf32>
    %1 = vector.shape_cast %0 : vector<1x8x128xf32> to vector<8x128xf32>
    %c0_2 = arith.constant 0 : index
    %c0_3 = arith.constant 0 : index
    %c0_4 = arith.constant 0 : index
    %2 = vector.load %arg5[%c0_2, %c0_3, %c0_4] : memref<1x128x128xf32, #tpu.memory_space<vmem>>, vector<1x128x128xf32>
    %3 = vector.shape_cast %2 : vector<1x128x128xf32> to vector<128x128xf32>
    %c0_5 = arith.constant 0 : index
    %c0_6 = arith.constant 0 : index
    %4 = vector.load %arg4[%c0_5, %c0_6] : memref<128x512xf32, #tpu.memory_space<vmem>>, vector<128x512xf32>
    %cst = arith.constant dense<0.000000e+00> : vector<8x512xf32>
    %5 = tpu.matmul %1, %4, %cst {dimension_numbers = #tpu.dot_dimension_numbers<[1], [0], [0], [1], [0, 0, 1, 1], [], []>} : vector<8x128xf32>, vector<128x512xf32>, vector<8x512xf32> -> vector<8x512xf32>
    %6 = vector.extract_strided_slice %5 {offsets = [0, 0], sizes = [8, 128], strides = [1, 1]} : vector<8x512xf32> to vector<8x128xf32>
    %cst_7 = arith.constant dense<0.000000e+00> : vector<8x128xf32>
    %7 = tpu.matmul %6, %3, %cst_7 {dimension_numbers = #tpu.dot_dimension_numbers<[1], [0], [0], [1], [0, 0, 1, 1], [], []>} : vector<8x128xf32>, vector<128x128xf32>, vector<8x128xf32> -> vector<8x128xf32>
    %c0_8 = arith.constant 0 : index
    %c0_9 = arith.constant 0 : index
    %c0_10 = arith.constant 0 : index
    %c0_11 = arith.constant 0 : index
    %8 = vector.load %arg6[%c0_8, %c0_9, %c0_10, %c0_11] : memref<1x4x8x128xf32, #tpu.memory_space<vmem>>, vector<1x1x8x128xf32>
    %9 = vector.shape_cast %8 : vector<1x1x8x128xf32> to vector<8x128xf32>
    %10 = vector.shape_cast %7 : vector<8x128xf32> to vector<1x1x8x128xf32>
    tpu.vector_store %arg6[%c0_8, %c0_9, %c0_10, %c0_11], %10 {strides = array<i32>} : memref<1x4x8x128xf32, #tpu.memory_space<vmem>>, vector<1x1x8x128xf32>,
    %11 = vector.extract_strided_slice %5 {offsets = [0, 128], sizes = [8, 128], strides = [1, 1]} : vector<8x512xf32> to vector<8x128xf32>
    %cst_12 = arith.constant dense<0.000000e+00> : vector<8x128xf32>
    %12 = tpu.matmul %11, %3, %cst_12 {dimension_numbers = #tpu.dot_dimension_numbers<[1], [0], [0], [1], [0, 0, 1, 1], [], []>} : vector<8x128xf32>, vector<128x128xf32>, vector<8x128xf32> -> vector<8x128xf32>
    %c0_13 = arith.constant 0 : index
    %c1 = arith.constant 1 : index
    %c0_14 = arith.constant 0 : index
    %c0_15 = arith.constant 0 : index
    %13 = vector.load %arg6[%c0_13, %c1, %c0_14, %c0_15] : memref<1x4x8x128xf32, #tpu.memory_space<vmem>>, vector<1x1x8x128xf32>
    %14 = vector.shape_cast %13 : vector<1x1x8x128xf32> to vector<8x128xf32>
    %15 = vector.shape_cast %12 : vector<8x128xf32> to vector<1x1x8x128xf32>
    tpu.vector_store %arg6[%c0_13, %c1, %c0_14, %c0_15], %15 {strides = array<i32>} : memref<1x4x8x128xf32, #tpu.memory_space<vmem>>, vector<1x1x8x128xf32>,
    %16 = vector.extract_strided_slice %5 {offsets = [0, 256], sizes = [8, 128], strides = [1, 1]} : vector<8x512xf32> to vector<8x128xf32>
    %cst_16 = arith.constant dense<0.000000e+00> : vector<8x128xf32>
    %17 = tpu.matmul %16, %3, %cst_16 {dimension_numbers = #tpu.dot_dimension_numbers<[1], [0], [0], [1], [0, 0, 1, 1], [], []>} : vector<8x128xf32>, vector<128x128xf32>, vector<8x128xf32> -> vector<8x128xf32>
    %c0_17 = arith.constant 0 : index
    %c2 = arith.constant 2 : index
    %c0_18 = arith.constant 0 : index
    %c0_19 = arith.constant 0 : index
    %18 = vector.load %arg6[%c0_17, %c2, %c0_18, %c0_19] : memref<1x4x8x128xf32, #tpu.memory_space<vmem>>, vector<1x1x8x128xf32>
    %19 = vector.shape_cast %18 : vector<1x1x8x128xf32> to vector<8x128xf32>
    %20 = vector.shape_cast %17 : vector<8x128xf32> to vector<1x1x8x128xf32>
    tpu.vector_store %arg6[%c0_17, %c2, %c0_18, %c0_19], %20 {strides = array<i32>} : memref<1x4x8x128xf32, #tpu.memory_space<vmem>>, vector<1x1x8x128xf32>,
    %21 = vector.extract_strided_slice %5 {offsets = [0, 384], sizes = [8, 128], strides = [1, 1]} : vector<8x512xf32> to vector<8x128xf32>
    %cst_20 = arith.constant dense<0.000000e+00> : vector<8x128xf32>
    %22 = tpu.matmul %21, %3, %cst_20 {dimension_numbers = #tpu.dot_dimension_numbers<[1], [0], [0], [1], [0, 0, 1, 1], [], []>} : vector<8x128xf32>, vector<128x128xf32>, vector<8x128xf32> -> vector<8x128xf32>
    %c0_21 = arith.constant 0 : index
    %c3 = arith.constant 3 : index
    %c0_22 = arith.constant 0 : index
    %c0_23 = arith.constant 0 : index
    %23 = vector.load %arg6[%c0_21, %c3, %c0_22, %c0_23] : memref<1x4x8x128xf32, #tpu.memory_space<vmem>>, vector<1x1x8x128xf32>
    %24 = vector.shape_cast %23 : vector<1x1x8x128xf32> to vector<8x128xf32>
    %25 = vector.shape_cast %22 : vector<8x128xf32> to vector<1x1x8x128xf32>
    tpu.vector_store %arg6[%c0_21, %c3, %c0_22, %c0_23], %25 {strides = array<i32>} : memref<1x4x8x128xf32, #tpu.memory_space<vmem>>, vector<1x1x8x128xf32>,
    return
  }
  func.func @transform_0(%arg0: i32, %arg1: i32, %arg2: i32) -> (i32, i32, i32) {
    %c0_i32 = arith.constant 0 : i32
    %c0_i32_0 = arith.constant 0 : i32
    return %arg1, %arg2, %c0_i32 : i32, i32, i32
  }
  func.func @transform_1(%arg0: i32, %arg1: i32, %arg2: i32) -> (i32, i32) {
    %c0_i32 = arith.constant 0 : i32
    %c0_i32_0 = arith.constant 0 : i32
    return %c0_i32, %arg0 : i32, i32
  }
  func.func @transform_2(%arg0: i32, %arg1: i32, %arg2: i32) -> (i32, i32, i32) {
    %c0_i32 = arith.constant 0 : i32
    %c0_i32_0 = arith.constant 0 : i32
    %c0_i32_1 = arith.constant 0 : i32
    return %arg1, %c0_i32, %c0_i32_0 : i32, i32, i32
  }
  func.func @transform_3(%arg0: i32, %arg1: i32, %arg2: i32) -> (i32, i32, i32, i32) {
    %c0_i32 = arith.constant 0 : i32
    %c0_i32_0 = arith.constant 0 : i32
    return %arg1, %arg0, %arg2, %c0_i32 : i32, i32, i32, i32
  }
}

</mosaic_0001>

<bundles_post_ra>
// kernel: biaffine_forward.1
= control target key start
LH: loop header
LB: loop body
LE: loop exit
PB: predicated region body
PF: predicated region fallthrough
CT: control target
= control target key end

     0   :  { %s1353_s12 = smov 0   ;;  %s1355_s13 = smov 0   ;;  %s1672_s0 = inlined_call_operand.vmem [shape: f32[2,8,128], index: 0, kind: input, shape index: {}]   ;;  %s1673_s1 = inlined_call_operand.vmem [shape: f32[128,512], index: 1, kind: input, shape index: {}]   ;;  %s1674_s2 = inlined_call_operand.vmem [shape: f32[2,128,128], index: 2, kind: input, shape index: {}]   ;;  %s1675_s3 = inlined_call_operand.vmem [shape: f32[2,4,8,128], index: 3, kind: output, shape index: {}]  }
   0x1   :  { %s1357_s14 = smov 0  }
   0x2 LB: > { %s28_s15 = sadd.s32 1, %s1324_s13  ;;  %p898_p0 = scmp.ge.s32.totalorder %s1328_s14, 1  ;;  %s1328_s14 = sphi %s1357_s14, %s13_s14   ;;  %s1324_s13 = sphi %s1355_s13, %s1677_s13   ;;  %s1320_s12 = sphi %s1353_s12, %s1676_s12  }
   0x3   : > { %p30_p1 = scmp.ge.s32.totalorder %s28_s15, 2  ;;  %p185_p2 = scmp.lt.s32.totalorder %s1328_s14, 3 }
   0x5   : > { %s1679_s15 = smov (%p30_p1, %s28_s15), 0  ;;  %p186_p3 = pnand %p898_p0, %p185_p2 }
   0x6   : > { %v277_v0 = vld [vmem:[%s1673_s1 + $0x8] sm:$0xff] (!%p186_p3)  ;;  %v276_v2 = vld [vmem:[%s1673_s1] sm:$0xff] (!%p186_p3)  ;;  %v1330_v7 = vmov (!%p186_p3), 0.0   ;;  %v279_v26 = vld [vmem:[%s1673_s1 + $0x18] sm:$0xff] (!%p186_p3)  ;;  %p228_p4 = scmp.lt.s32.totalorder (!%p186_p3), %s1320_s12, 1  ;;  %vm1332_vm0 = vmmov (!%p186_p3), 0  }
   0x7   : > { %189 = sbr.rel (%p186_p3) target bundleno = 500 (0x1f4), region = 32  ;;  %v281_v1 = vld [vmem:[%s1673_s1 + $0x28] sm:$0xff] (!%p186_p3)  ;;  %v280_v4 = vld [vmem:[%s1673_s1 + $0x20] sm:$0xff] (!%p186_p3)  ;;  %404 = vmatprep.mubr.f32.mxu0 (!%p186_p3), %v1330_v7  ;;  %475 = vmatprep.mubr.f32.mxu1 (!%p186_p3), %v1330_v7  ;;  %v283_v28 = vld [vmem:[%s1673_s1 + $0x38] sm:$0xff] (!%p186_p3) }
   0x8   : > { %v1119_v3 = vpack.c.bf16 (!%p186_p3), %v281_v1, %v277_v0  ;;  %v285_v5 = vld [vmem:[%s1673_s1 + $0x48] sm:$0xff] (!%p186_p3)  ;;  %v1121_v8 = vpack.c.bf16 (!%p186_p3), %v280_v4, %v276_v2  ;;  %v284_v10 = vld [vmem:[%s1673_s1 + $0x40] sm:$0xff] (!%p186_p3)  ;;  %v278_v29 = vld [vmem:[%s1673_s1 + $0x10] sm:$0xff] (!%p186_p3)  ;;  %v1151_v33 = vpack.c.bf16 (!%p186_p3), %v283_v28, %v279_v26 }
   0x9   : > { %v289_v6 = vld [vmem:[%s1673_s1 + $0x68] sm:$0xff] (!%p186_p3)  ;;  %v288_v11 = vld [vmem:[%s1673_s1 + $0x60] sm:$0xff] (!%p186_p3)  ;;  %v282_v30 = vld [vmem:[%s1673_s1 + $0x30] sm:$0xff] (!%p186_p3) }
   0xa   : > { %v1123_v9 = vpack.c.bf16 (!%p186_p3), %v289_v6, %v285_v5  ;;  %v293_v12 = vld [vmem:[%s1673_s1 + $0x88] sm:$0xff] (!%p186_p3)  ;;  %1120 = vmatprep.subr.bf16.mxu0 (!%p186_p3), %v1119_v3  ;;  %v1125_v14 = vpack.c.bf16 (!%p186_p3), %v288_v11, %v284_v10  ;;  %v292_v16 = vld [vmem:[%s1673_s1 + $0x80] sm:$0xff] (!%p186_p3)  ;;  %v1153_v34 = vpack.c.bf16 (!%p186_p3), %v282_v30, %v278_v29  ;;  %v287_v35 = vld [vmem:[%s1673_s1 + $0x58] sm:$0xff] (!%p186_p3)  ;;  %1152 = vmatprep.subr.bf16.mxu1 (!%p186_p3), %v1151_v33  ;;  %v1331_v33 = vmov (!%p186_p3), 0.0|0.0  }
   0xb   : > { %v297_v13 = vld [vmem:[%s1673_s1 + $0xa8] sm:$0xff] (!%p186_p3)  ;;  %1122 = vmatpush1.bf16.msra.mxu0 (!%p186_p3), %v1121_v8  ;;  %v296_v17 = vld [vmem:[%s1673_s1 + $0xa0] sm:$0xff] (!%p186_p3)  ;;  %v291_v36 = vld [vmem:[%s1673_s1 + $0x78] sm:$0xff] (!%p186_p3) }
   0xc   : > { %1124 = vmatprep.subr.bf16.mxu0 (!%p186_p3), %v1123_v9  ;;  %v1127_v15 = vpack.c.bf16 (!%p186_p3), %v297_v13, %v293_v12  ;;  %v301_v18 = vld [vmem:[%s1673_s1 + $0xc8] sm:$0xff] (!%p186_p3)  ;;  %v1129_v20 = vpack.c.bf16 (!%p186_p3), %v296_v17, %v292_v16  ;;  %v300_v22 = vld [vmem:[%s1673_s1 + $0xc0] sm:$0xff] (!%p186_p3)  ;;  %v1155_v38 = vpack.c.bf16 (!%p186_p3), %v291_v36, %v287_v35  ;;  %v286_v39 = vld [vmem:[%s1673_s1 + $0x50] sm:$0xff] (!%p186_p3)  ;;  %1154 = vmatpush1.bf16.msra.mxu1 (!%p186_p3), %v1153_v34 }
   0xd   : > { %v305_v19 = vld [vmem:[%s1673_s1 + $0xe8] sm:$0xff] (!%p186_p3)  ;;  %v304_v23 = vld [vmem:[%s1673_s1 + $0xe0] sm:$0xff] (!%p186_p3)  ;;  %v290_v40 = vld [vmem:[%s1673_s1 + $0x70] sm:$0xff] (!%p186_p3) }
   0xe   : > { %v1131_v21 = vpack.c.bf16 %v305_v19, %v301_v18  ;;  %v309_v24 = vld [vmem:[%s1673_s1 + $0x108] sm:$0xff]  ;;  %v308_v27 = vld [vmem:[%s1673_s1 + $0x100] sm:$0xff]  ;;  %v1133_v31 = vpack.c.bf16 %v304_v23, %v300_v22  ;;  %v295_v41 = vld [vmem:[%s1673_s1 + $0x98] sm:$0xff]  ;;  %v1157_v45 = vpack.c.bf16 %v290_v40, %v286_v39  ;;  %1156 = vmatprep.subr.bf16.mxu1 %v1155_v38  ;;  %s1681_s12 = smov (!%p228_p4, %s1320_s12), 1 }
   0xf   : > { %1126 = vmatpush1.bf16.msra.mxu0 %v1125_v14  ;;  %v313_v25 = vld [vmem:[%s1673_s1 + $0x128] sm:$0xff]  ;;  %v312_v32 = vld [vmem:[%s1673_s1 + $0x120] sm:$0xff]  ;;  %v299_v44 = vld [vmem:[%s1673_s1 + $0xb8] sm:$0xff]  ;;  %s909_s20 = sshll.u32 %s1681_s12, 7  ;;  %s899_s29 = sshll.u32 %s1681_s12, 3 }
  0x10   : > { %1128 = vmatprep.subr.bf16.mxu0 %v1127_v15  ;;  %v1135_v37 = vpack.c.bf16 %v313_v25, %v309_v24  ;;  %v317_v42 = vld [vmem:[%s1673_s1 + $0x148] sm:$0xff]  ;;  %v1137_v46 = vpack.c.bf16 %v312_v32, %v308_v27  ;;  %v316_v47 = vld [vmem:[%s1673_s1 + $0x140] sm:$0xff]  ;;  %v1159_v48 = vpack.c.bf16 %v299_v44, %v295_v41  ;;  %v294_v49 = vld [vmem:[%s1673_s1 + $0x90] sm:$0xff]  ;;  %1158 = vmatpush1.bf16.msra.mxu1 %v1157_v45  ;;  %s1548_s9 = scalar_lea.vmem %s1674_s2, %s909_s20  ;;  %s234_s16 = scalar_lea.vmem %s1672_s0, %s899_s29 }
  0x11   : > { %v321_v43 = vld [vmem:[%s1673_s1 + $0x168] sm:$0xff]  ;;  %v298_v50 = vld [vmem:[%s1673_s1 + $0xb0] sm:$0xff]  ;;  %v320_v52 = vld [vmem:[%s1673_s1 + $0x160] sm:$0xff] }
  0x12   : > { %v1139_v51 = vpack.c.bf16 %v321_v43, %v317_v42  ;;  %v303_v53 = vld [vmem:[%s1673_s1 + $0xd8] sm:$0xff]  ;;  %v325_v55 = vld [vmem:[%s1673_s1 + $0x188] sm:$0xff]  ;;  %v1161_v57 = vpack.c.bf16 %v298_v50, %v294_v49  ;;  %v1141_v58 = vpack.c.bf16 %v320_v52, %v316_v47  ;;  %v324_v59 = vld [vmem:[%s1673_s1 + $0x180] sm:$0xff]  ;;  %1160 = vmatprep.subr.bf16.mxu1 %v1159_v48 }
  0x13   : > { %1130 = vmatpush1.bf16.msra.mxu0 %v1129_v20  ;;  %v307_v54 = vld [vmem:[%s1673_s1 + $0xf8] sm:$0xff]  ;;  %v329_v56 = vld [vmem:[%s1673_s1 + $0x1a8] sm:$0xff]  ;;  %v302_v61 = vld [vmem:[%s1673_s1 + $0xd0] sm:$0xff] }
  0x14   : > { %1132 = vmatprep.subr.bf16.mxu0 %v1131_v21  ;;  %v1163_v60 = vpack.c.bf16 %v307_v54, %v303_v53  ;;  %v306_v62 = vld [vmem:[%s1673_s1 + $0xf0] sm:$0xff]  ;;  %v1143_v63 = vpack.c.bf16 %v329_v56, %v325_v55  ;;  %v328_v0 = vld [vmem:[%s1673_s1 + $0x1a0] sm:$0xff]  ;;  %v311_v1 = vld [vmem:[%s1673_s1 + $0x118] sm:$0xff]  ;;  %1162 = vmatpush1.bf16.msra.mxu1 %v1161_v57 }
  0x15   : > { %v315_v2 = vld [vmem:[%s1673_s1 + $0x138] sm:$0xff]  ;;  %v333_v3 = vld [vmem:[%s1673_s1 + $0x1c8] sm:$0xff]  ;;  %v1165_v5 = vpack.c.bf16 %v306_v62, %v302_v61  ;;  %v1145_v6 = vpack.c.bf16 %v328_v0, %v324_v59  ;;  %v332_v8 = vld [vmem:[%s1673_s1 + $0x1c0] sm:$0xff] }
  0x16   : > { %v337_v4 = vld [vmem:[%s1673_s1 + $0x1e8] sm:$0xff]  ;;  %1164 = vmatprep.subr.bf16.mxu1 %v1163_v60  ;;  %v1167_v9 = vpack.c.bf16 %v315_v2, %v311_v1  ;;  %v310_v10 = vld [vmem:[%s1673_s1 + $0x110] sm:$0xff]  ;;  %v336_v13 = vld [vmem:[%s1673_s1 + $0x1e0] sm:$0xff] }
  0x17   : > { %1134 = vmatpush1.bf16.msra.mxu0 %v1133_v31  ;;  %v314_v11 = vld [vmem:[%s1673_s1 + $0x130] sm:$0xff]  ;;  %v1147_v12 = vpack.c.bf16 %v337_v4, %v333_v3  ;;  %v319_v14 = vld [vmem:[%s1673_s1 + $0x158] sm:$0xff]  ;;  %v1149_v17 = vpack.c.bf16 %v336_v13, %v332_v8  ;;  %v260_v23 = vld [vmem:[%s1548_s9] sm:$0xff] }
  0x18   : > { %1136 = vmatprep.subr.bf16.mxu0 %v1135_v37  ;;  %v323_v15 = vld [vmem:[%s1673_s1 + $0x178] sm:$0xff]  ;;  %1166 = vmatpush1.bf16.msra.mxu1 %v1165_v5  ;;  %v1169_v16 = vpack.c.bf16 %v314_v11, %v310_v10  ;;  %v318_v19 = vld [vmem:[%s1673_s1 + $0x150] sm:$0xff]  ;;  %v261_v24 = vld [vmem:[%s1548_s9 + $0x8] sm:$0xff] }
  0x19   : > { %1168 = vmatprep.subr.bf16.mxu1 %v1167_v9  ;;  %v1171_v18 = vpack.c.bf16 %v323_v15, %v319_v14  ;;  %v322_v20 = vld [vmem:[%s1673_s1 + $0x170] sm:$0xff]  ;;  %v327_v21 = vld [vmem:[%s1673_s1 + $0x198] sm:$0xff]  ;;  %v259_v25 = vld [vmem:[%s234_s16] sm:$0xff]  ;;  %v1576_v31 = vpack.c.bf16 %v261_v24, %v260_v23 }
  0x1a   : > { %v331_v22 = vld [vmem:[%s1673_s1 + $0x1b8] sm:$0xff]  ;;  %v1173_v26 = vpack.c.bf16 %v322_v20, %v318_v19  ;;  %v326_v28 = vld [vmem:[%s1673_s1 + $0x190] sm:$0xff]  ;;  %v264_v41 = vld [vmem:[%s1548_s9 + $0x20] sm:$0xff] }
  0x1b   : > { %1138 = vmatpush1.bf16.msra.mxu0 %v1137_v46  ;;  %v1175_v27 = vpack.c.bf16 %v331_v22, %v327_v21  ;;  %v330_v29 = vld [vmem:[%s1673_s1 + $0x1b0] sm:$0xff]  ;;  %v335_v30 = vld [vmem:[%s1673_s1 + $0x1d8] sm:$0xff]  ;;  %v265_v42 = vld [vmem:[%s1548_s9 + $0x28] sm:$0xff] }
  0x1c   : > { %1140 = vmatprep.subr.bf16.mxu0 %v1139_v51  ;;  %1170 = vmatpush1.bf16.msra.mxu1 %v1169_v16  ;;  %v339_v32 = vld [vmem:[%s1673_s1 + $0x1f8] sm:$0xff]  ;;  %v262_v34 = vld [vmem:[%s1548_s9 + $0x10] sm:$0xff]  ;;  %v1177_v36 = vpack.c.bf16 %v330_v29, %v326_v28  ;;  %v1597_v44 = vpack.c.bf16 %v265_v42, %v264_v41  ;;  %v268_v48 = vld [vmem:[%s1548_s9 + $0x40] sm:$0xff] }
  0x1d   : > { %1172 = vmatprep.subr.bf16.mxu1 %v1171_v18  ;;  %v263_v35 = vld [vmem:[%s1548_s9 + $0x18] sm:$0xff]  ;;  %v1179_v37 = vpack.c.bf16 %v339_v32, %v335_v30  ;;  %v334_v38 = vld [vmem:[%s1673_s1 + $0x1d0] sm:$0xff]  ;;  %v269_v49 = vld [vmem:[%s1548_s9 + $0x48] sm:$0xff] }
  0x1e   : > { %v338_v39 = vld [vmem:[%s1673_s1 + $0x1f0] sm:$0xff]  ;;  %v1591_v40 = vpack.c.bf16 %v263_v35, %v262_v34  ;;  %v267_v46 = vld [vmem:[%s1548_s9 + $0x38] sm:$0xff]  ;;  %v1196_v50 = vpack.c.bf16 %v269_v49, %v268_v48  ;;  %v272_v54 = vld [vmem:[%s1548_s9 + $0x60] sm:$0xff] }
  0x1f   : > { %1142 = vmatpush1.bf16.msra.mxu0 %v1141_v58  ;;  %v1181_v43 = vpack.c.bf16 %v338_v39, %v334_v38  ;;  %v266_v45 = vld [vmem:[%s1548_s9 + $0x30] sm:$0xff]  ;;  %v271_v52 = vld [vmem:[%s1548_s9 + $0x58] sm:$0xff]  ;;  %v273_v55 = vld [vmem:[%s1548_s9 + $0x68] sm:$0xff] }
  0x20   : > { %1144 = vmatprep.subr.bf16.mxu0 %v1143_v63  ;;  %1174 = vmatpush1.bf16.msra.mxu1 %v1173_v26  ;;  %v1604_v47 = vpack.c.bf16 %v267_v46, %v266_v45  ;;  %v270_v51 = vld [vmem:[%s1548_s9 + $0x50] sm:$0xff]  ;;  %v1202_v56 = vpack.c.bf16 %v273_v55, %v272_v54  ;;  %v275_v58 = vld [vmem:[%s1548_s9 + $0x78] sm:$0xff] }
  0x21   : > { %1176 = vmatprep.subr.bf16.mxu1 %v1175_v27  ;;  %v1199_v53 = vpack.c.bf16 %v271_v52, %v270_v51  ;;  %v274_v57 = vld [vmem:[%s1548_s9 + $0x70] sm:$0xff]  ;;  %s910_s9 = sshll.u32 %s1681_s12, 5 }
  0x22   : > { %v1205_v59 = vpack.c.bf16 %v275_v58, %v274_v57  ;;  %s257_s17 = scalar_lea.vmem %s1675_s3, %s910_s9 }
  0x23   : > { %1146 = vmatpush1.bf16.msra.mxu0 %v1145_v6 }
  0x24   : > { %1148 = vmatprep.subr.bf16.mxu0 %v1147_v12  ;;  %1178 = vmatpush1.bf16.msra.mxu1 %v1177_v36 }
  0x25   : > { %1180 = vmatprep.subr.bf16.mxu1 %v1179_v37 }
  0x27   : > { %1150 = vmatpush1.bf16.msra.mxu0 %v1149_v17 }
  0x28   : > { %1183 = vmatprep.subr.bf16.mxu0 %v1331_v33  ;;  %1182 = vmatpush1.bf16.msra.mxu1 %v1181_v43 }
  0x29   : > { %1207 = vmatprep.subr.bf16.mxu1 %v1331_v33 }
  0x2a   : > { %405 = vmatmul.mubr.f32.vlgmr.msra.gmra.mrb[0].mxu0 %v259_v25 }
  0x2b   : > { %1185 = vmatpush3.bf16.msra.mxu0 %v1576_v31  ;;  %476 = vmatmul.mubr.f32.vlgmr.msra.gmra.mrb[0].mxu1 %v259_v25 }
  0x2c   : > { %1186 = vmatprep.subr.bf16.mxu0 %v1331_v33  ;;  %1209 = vmatpush3.bf16.msra.mxu1 %v1576_v31 }
  0x2d   : > { %1210 = vmatprep.subr.bf16.mxu1 %v1331_v33  ;;  %1011 = vmatprep.mubr.msk.f32.mxu0 %vm1332_vm0, %v1330_v7 }
  0x2e   : > { %1046 = vmatprep.mubr.msk.f32.mxu1 %vm1332_vm0, %v1330_v7 }
  0x2f   : > { %1188 = vmatpush3.bf16.msra.mxu0 %v1591_v40 }
  0x30   : > { %1189 = vmatprep.subr.bf16.mxu0 %v1331_v33  ;;  %1212 = vmatpush3.bf16.msra.mxu1 %v1591_v40 }
  0x31   : > { %1213 = vmatprep.subr.bf16.mxu1 %v1331_v33 }
  0x33   : > { %1191 = vmatpush3.bf16.msra.mxu0 %v1597_v44 }
  0x34   : > { %1192 = vmatprep.subr.bf16.mxu0 %v1331_v33  ;;  %1215 = vmatpush3.bf16.msra.mxu1 %v1597_v44 }
  0x35   : > { %1216 = vmatprep.subr.bf16.mxu1 %v1331_v33 }
  0x37   : > { %1194 = vmatpush3.bf16.msra.mxu0 %v1604_v47 }
  0x38   : > { %1195 = vmatprep.subr.bf16.mxu0 %v1331_v33  ;;  %1218 = vmatpush3.bf16.msra.mxu1 %v1604_v47 }
  0x39   : > { %1219 = vmatprep.subr.bf16.mxu1 %v1331_v33 }
  0x3b   : > { %1197 = vmatpush3.bf16.msra.mxu0 %v1196_v50 }
  0x3c   : > { %1198 = vmatprep.subr.bf16.mxu0 %v1331_v33  ;;  %1221 = vmatpush3.bf16.msra.mxu1 %v1196_v50 }
  0x3d   : > { %1222 = vmatprep.subr.bf16.mxu1 %v1331_v33 }
  0x3f   : > { %1200 = vmatpush3.bf16.msra.mxu0 %v1199_v53 }
  0x40   : > { %1201 = vmatprep.subr.bf16.mxu0 %v1331_v33  ;;  %1224 = vmatpush3.bf16.msra.mxu1 %v1199_v53 }
  0x41   : > { %1225 = vmatprep.subr.bf16.mxu1 %v1331_v33 }
  0x43   : > { %1203 = vmatpush3.bf16.msra.mxu0 %v1202_v56 }
  0x44   : > { %1204 = vmatprep.subr.bf16.mxu0 %v1331_v33  ;;  %1227 = vmatpush3.bf16.msra.mxu1 %v1202_v56 }
  0x45   : > { %1228 = vmatprep.subr.bf16.mxu1 %v1331_v33 }
  0x47   : > { %1206 = vmatpush3.bf16.msra.mxu0 %v1205_v59 }
  0x48   : > { %1231 = vmatprep.subr.bf16.mxu0 %v1331_v33  ;;  %1230 = vmatpush3.bf16.msra.mxu1 %v1205_v59 }
  0x49   : > { %1255 = vmatprep.subr.bf16.mxu1 %v1331_v33 }
  0xfd   : > { %v406_v60 = vpop.f32.mrb[0].mxu0 }
  0xfe   : > { %v408_v61 = vpop.f32.mrb[1].mxu0  ;;  %1012 = vmatmul.mubr.f32.vlgmr.msra.gmra.mrb[2].mxu0 %v406_v60  ;;  %v477_v62 = vpop.f32.mrb[0].mxu1 }
  0xff   : > { %1233 = vmatpush3.bf16.msra.mxu0 %v1576_v31  ;;  %1047 = vmatmul.mubr.f32.vlgmr.msra.gmra.mrb[2].mxu1 %v408_v61  ;;  %v479_v63 = vpop.f32.mrb[1].mxu1 }
 0x100   : > { %1257 = vmatpush3.bf16.msra.mxu1 %v1576_v31  ;;  %1234 = vmatprep.subr.bf16.mxu0 %v1331_v33 }
 0x101   : > { %1258 = vmatprep.subr.bf16.mxu1 %v1331_v33  ;;  %1081 = vmatprep.mubr.msk.f32.mxu0 %vm1332_vm0, %v1330_v7 }
 0x102   : > { %1116 = vmatprep.mubr.msk.f32.mxu1 %vm1332_vm0, %v1330_v7 }
 0x103   : > { %1236 = vmatpush3.bf16.msra.mxu0 %v1591_v40 }
 0x104   : > { %1260 = vmatpush3.bf16.msra.mxu1 %v1591_v40  ;;  %1237 = vmatprep.subr.bf16.mxu0 %v1331_v33 }
 0x105   : > { %1261 = vmatprep.subr.bf16.mxu1 %v1331_v33 }
 0x107   : > { %1239 = vmatpush3.bf16.msra.mxu0 %v1597_v44 }
 0x108   : > { %1263 = vmatpush3.bf16.msra.mxu1 %v1597_v44  ;;  %1240 = vmatprep.subr.bf16.mxu0 %v1331_v33 }
 0x109   : > { %1264 = vmatprep.subr.bf16.mxu1 %v1331_v33 }
 0x10b   : > { %1242 = vmatpush3.bf16.msra.mxu0 %v1604_v47 }
 0x10c   : > { %1266 = vmatpush3.bf16.msra.mxu1 %v1604_v47  ;;  %1243 = vmatprep.subr.bf16.mxu0 %v1331_v33 }
 0x10d   : > { %1267 = vmatprep.subr.bf16.mxu1 %v1331_v33 }
 0x10f   : > { %1245 = vmatpush3.bf16.msra.mxu0 %v1196_v50 }
 0x110   : > { %1269 = vmatpush3.bf16.msra.mxu1 %v1196_v50  ;;  %1246 = vmatprep.subr.bf16.mxu0 %v1331_v33 }
 0x111   : > { %1270 = vmatprep.subr.bf16.mxu1 %v1331_v33 }
 0x113   : > { %1248 = vmatpush3.bf16.msra.mxu0 %v1199_v53 }
 0x114   : > { %1272 = vmatpush3.bf16.msra.mxu1 %v1199_v53  ;;  %1249 = vmatprep.subr.bf16.mxu0 %v1331_v33 }
 0x115   : > { %1273 = vmatprep.subr.bf16.mxu1 %v1331_v33 }
 0x117   : > { %1251 = vmatpush3.bf16.msra.mxu0 %v1202_v56 }
 0x118   : > { %1275 = vmatpush3.bf16.msra.mxu1 %v1202_v56  ;;  %1252 = vmatprep.subr.bf16.mxu0 %v1331_v33 }
 0x119   : > { %1276 = vmatprep.subr.bf16.mxu1 %v1331_v33 }
 0x11b   : > { %1254 = vmatpush3.bf16.msra.mxu0 %v1205_v59 }
 0x11c   : > { %1278 = vmatpush3.bf16.msra.mxu1 %v1205_v59 }
 0x11e   : > { %1082 = vmatmul.mubr.f32.vlgmr.msra.gmra.mrb[4].mxu0 %v477_v62 }
 0x11f   : > { %1117 = vmatmul.mubr.f32.vlgmr.msra.gmra.mrb[4].mxu1 %v479_v63 }
 0x1d1   : > { %v548_v7 = vpop.f32.mrb[2].mxu0 }
 0x1d2   : > { %552 = vst [vmem:[%s257_s17] sm:$0xff] %v548_v7  ;;  %v1013_v0 = vpop.f32.mrb[3].mxu0  ;;  %v619_v1 = vpop.f32.mrb[2].mxu1 }
 0x1d3   : > { %904 = vst [vmem:[%s257_s17 + $0x8] sm:$0xff] %v619_v1  ;;  %v1048_v2 = vpop.f32.mrb[3].mxu1 }
 0x1f1   : > { %v691_v3 = vpop.f32.mrb[4].mxu0 }
 0x1f2   : > { %905 = vst [vmem:[%s257_s17 + $0x10] sm:$0xff] %v691_v3  ;;  %v1083_v4 = vpop.f32.mrb[5].mxu0  ;;  %v763_v5 = vpop.f32.mrb[4].mxu1 }
 0x1f3   : > { %906 = vst [vmem:[%s257_s17 + $0x18] sm:$0xff] %v763_v5  ;;  %v1118_v6 = vpop.f32.mrb[5].mxu1 }
 0x1f4 PF: > { %s13_s14 = sadd.s32 1, %s1328_s14   ;;  %s1676_s12 = smov %s1324_s13 }
 0x1f5   : > { %p10_p5 = scmp.ge.s32.totalorder %s13_s14, 4   ;;  %s1677_s13 = smov %s1679_s15 }
 0x1f7   :  { %12 = sbr.rel (!%p10_p5) target bundleno = 2 (0x2), region = 71 }

</bundles_post_ra>
